<compile_context>
chip_gen: v6e
topology: v6e:2x2x1
jax: 0.10.0
libtpu: 0.0.40
codegen_flags: <defaults>
</compile_context>

<pallas_src>
import functools

import jax
import jax.numpy as jnp
from jax import lax
from jax.experimental import pallas as pl
from jax.experimental.pallas import tpu as pltpu


def _round_up(x, m):
    return ((x + m - 1) // m) * m


def _single_block_kernel(inv_hw, x_ref, o_ref):
    # Whole spatial extent in one lane block: reduce and scale directly, no mask,
    # no scratch, no revisited output block.
    x = x_ref[...].astype(jnp.float32)                               # (TR, HW)
    o_ref[...] = (jnp.sum(x, axis=-1, keepdims=True) * inv_hw).astype(o_ref.dtype)


def _make_multi_block_kernel(hw, tl, inv_hw, mask_last):
    n_groups = tl // 128  # bounded (tl <= 4096) -> small static unroll

    def fold(acc_ref, x):
        # Lane-wide accumulation: pure VPU vreg adds, no per-tile XLU reduce and
        # no narrow (TR,1) read-modify-write.
        acc = acc_ref[...]
        for g in range(n_groups):
            acc = acc + x[:, g * 128:(g + 1) * 128]
        acc_ref[...] = acc

    def kernel(x_ref, o_ref, acc_ref):
        k = pl.program_id(1)
        nk = pl.num_programs(1)

        @pl.when(k == 0)
        def _():
            acc_ref[...] = jnp.zeros_like(acc_ref)

        if mask_last:
            # Mask only the final (partial) lane block; all other tiles take the
            # mask-free path (no iota/compare/select per element).
            @pl.when(k < nk - 1)
            def _():
                fold(acc_ref, x_ref[...].astype(jnp.float32))

            @pl.when(k == nk - 1)
            def _():
                x = x_ref[...].astype(jnp.float32)
                lane = lax.broadcasted_iota(jnp.int32, x.shape, 1)
                x = jnp.where(k * tl + lane < hw, x, 0.0)
                fold(acc_ref, x)
        else:
            fold(acc_ref, x_ref[...].astype(jnp.float32))

        @pl.when(k == nk - 1)
        def _():
            s = jnp.sum(acc_ref[...], axis=-1, keepdims=True)  # one XLU reduce
            o_ref[...] = (s * inv_hw).astype(o_ref.dtype)

    return kernel


def global_avg_pool2d(x, *, target_tile_bytes=4 << 20):
    """x: (N, C, H, W) -> (N, C, 1, 1); matches F.avg_pool2d(x, (H, W))."""
    N, C, H, W = x.shape
    NC, HW = N * C, H * W
    x2 = x.reshape(NC, HW)
    inv_hw = 1.0 / float(HW)

    itemsize = jnp.dtype(x.dtype).itemsize
    # Sublane packing: 8 rows for 32-bit, 16 for 16-bit, 32 for 8-bit dtypes.
    sub = 8 if itemsize >= 4 else (16 if itemsize == 2 else 32)

    HW_pad = _round_up(HW, 128)
    TR_max = _round_up(NC, sub)

    # Regime A: whole spatial extent fits in one lane block at the byte target.
    single_lane_block = HW_pad * itemsize * sub <= target_tile_bytes
    if single_lane_block:
        TL, TL_pad = HW, HW_pad       # full extent -> legal block, no mask
    else:
        # Regime B (rare for GAP): split the lane axis into 128-multiple blocks,
        # capped at 4096 lanes to bound the in-kernel lane-group unroll.
        TL = max(128, (target_tile_bytes // (sub * itemsize) // 128) * 128)
        TL = min(TL, 4096, HW_pad)
        TL_pad = TL

    # Grow the row tile until the input tile hits the byte target.
    TR = min(_round_up(max(1, target_tile_bytes // (TL_pad * itemsize)), sub), TR_max)
    # If the row grid would collapse to one block, split it so both of v7x's
    # TensorCores get work -- as long as tiles stay reasonably large.
    if TR >= TR_max and NC > sub:
        half = _round_up((NC + 1) // 2, sub)
        if half * TL_pad * itemsize >= (256 << 10):
            TR = half

    cost = pl.CostEstimate(
        flops=NC * HW,
        transcendentals=0,
        bytes_accessed=NC * HW * itemsize + NC * itemsize,
    )
    vmem_limit = 32 << 20  # safe on v5e/v6e (128 MiB phys) and v7x (64 MiB phys)

    if single_lane_block:
        out2 = pl.pallas_call(
            functools.partial(_single_block_kernel, inv_hw),
            out_shape=jax.ShapeDtypeStruct((NC, 1), x.dtype),
            grid_spec=pltpu.PrefetchScalarGridSpec(
                num_scalar_prefetch=0,
                grid=(pl.cdiv(NC, TR),),
                in_specs=[pl.BlockSpec((TR, TL), lambda r: (r, 0))],
                out_specs=pl.BlockSpec((TR, 1), lambda r: (r, 0)),
            ),
            compiler_params=pltpu.CompilerParams(
                dimension_semantics=("parallel",),
                vmem_limit_bytes=vmem_limit,
            ),
            cost_estimate=cost,
        )(x2)
    else:
        mask_last = (HW % TL) != 0
        kernel = _make_multi_block_kernel(HW, TL, inv_hw, mask_last)
        out2 = pl.pallas_call(
            kernel,
            out_shape=jax.ShapeDtypeStruct((NC, 1), x.dtype),
            grid_spec=pltpu.PrefetchScalarGridSpec(
                num_scalar_prefetch=0,
                grid=(pl.cdiv(NC, TR), pl.cdiv(HW, TL)),
                in_specs=[pl.BlockSpec((TR, TL), lambda r, k: (r, k))],
                out_specs=pl.BlockSpec((TR, 1), lambda r, k: (r, 0)),
                scratch_shapes=[pltpu.VMEM((TR, 128), jnp.float32)],
            ),
            compiler_params=pltpu.CompilerParams(
                dimension_semantics=("parallel", "arbitrary"),
                vmem_limit_bytes=vmem_limit,
            ),
            cost_estimate=cost,
        )(x2)

    return out2.reshape(N, C, 1, 1)


if __name__ == "__main__":
    key = jax.random.PRNGKey(0)

    # Primary check: small NCHW feature map (single-lane-block fast path).
    N, C, H, W = 2, 4, 16, 16
    x = jax.random.normal(key, (N, C, H, W), dtype=jnp.float32)
    out = jax.block_until_ready(global_avg_pool2d(x))
    ref = jnp.mean(x, axis=(2, 3), keepdims=True)
    assert out.shape == (N, C, 1, 1), out.shape
    assert jnp.allclose(out, ref, atol=1e-5, rtol=1e-5), "mismatch (single-block path)"

    # Non-128-multiple spatial extent: full-extent lane block, mask-free.
    x2 = jax.random.normal(jax.random.PRNGKey(1), (2, 4, 10, 10), dtype=jnp.float32)
    out2 = jax.block_until_ready(global_avg_pool2d(x2))
    ref2 = jnp.mean(x2, axis=(2, 3), keepdims=True)
    assert jnp.allclose(out2, ref2, atol=1e-5, rtol=1e-5), "mismatch (full-extent block)"

    # Exercise the large-spatial multi-lane-block path (HW % TL == 0, no mask)
    # by shrinking the tile-byte target.
    x3 = jax.random.normal(jax.random.PRNGKey(2), (2, 4, 16, 16), dtype=jnp.float32)
    out3 = jax.block_until_ready(global_avg_pool2d(x3, target_tile_bytes=2048))
    ref3 = jnp.mean(x3, axis=(2, 3), keepdims=True)
    assert jnp.allclose(out3, ref3, atol=1e-5, rtol=1e-5), "mismatch (multi-block path)"

    # Exercise the multi-lane-block path with a partial (masked) final block.
    x4 = jax.random.normal(jax.random.PRNGKey(3), (2, 4, 10, 14), dtype=jnp.float32)
    out4 = jax.block_until_ready(global_avg_pool2d(x4, target_tile_bytes=2048))
    ref4 = jnp.mean(x4, axis=(2, 3), keepdims=True)
    assert jnp.allclose(out4, ref4, atol=1e-5, rtol=1e-5), "mismatch (masked multi-block path)"

    print("KERNEL_OK")
</pallas_src>

<mosaic_0001>
module attributes {stable_mosaic.version = 11 : i64} {
  func.func @_single_block_kernel(%arg0: i32, %arg1: memref<8x256xf32, #tpu.memory_space<vmem>>, %arg2: memref<8x1xf32, #tpu.memory_space<vmem>>) attributes {dimension_semantics = [#tpu.dimension_semantics<parallel>], iteration_bounds = array<i64: 1>, scalar_prefetch = 0 : i64, scratch_operands = 0 : i64, tpu.core_type = #tpu.core_type<tc>, window_params = [{transform_indices = @transform_0, window_bounds = array<i64: 8, 256>}, {transform_indices = @transform_1, window_bounds = array<i64: 8, 1>}]} {
    %c0 = arith.constant 0 : index
    %c0_0 = arith.constant 0 : index
    %0 = vector.load %arg1[%c0, %c0_0] : memref<8x256xf32, #tpu.memory_space<vmem>>, vector<8x256xf32>
    %cst = arith.constant dense<0.000000e+00> : vector<8xf32>
    %1 = vector.multi_reduction <add>, %0, %cst [1] : vector<8x256xf32> to vector<8xf32>
    %2 = vector.shape_cast %1 : vector<8xf32> to vector<8x1xf32>
    %cst_1 = arith.constant 3.906250e-03 : f32
    %3 = vector.broadcast %cst_1 : f32 to vector<8x1xf32>
    %4 = arith.mulf %2, %3 : vector<8x1xf32>
    %c0_2 = arith.constant 0 : index
    %c0_3 = arith.constant 0 : index
    %5 = vector.load %arg2[%c0_2, %c0_3] : memref<8x1xf32, #tpu.memory_space<vmem>>, vector<8x1xf32>
    tpu.vector_store %arg2[%c0_2, %c0_3], %4 {strides = array<i32>} : memref<8x1xf32, #tpu.memory_space<vmem>>, vector<8x1xf32>,
    return
  }
  func.func @transform_0(%arg0: i32) -> (i32, i32) {
    %c0_i32 = arith.constant 0 : i32
    %c0_i32_0 = arith.constant 0 : i32
    return %arg0, %c0_i32 : i32, i32
  }
  func.func @transform_1(%arg0: i32) -> (i32, i32) {
    %c0_i32 = arith.constant 0 : i32
    %c0_i32_0 = arith.constant 0 : i32
    return %arg0, %c0_i32 : i32, i32
  }
}

</mosaic_0001>

<bundles_post_ra>
// kernel: tpu_custom_call.1
= control target key start
LH: loop header
LB: loop body
LE: loop exit
PB: predicated region body
PF: predicated region fallthrough
CT: control target
= control target key end

     0   :  { %6 = vsyncpa [#allocation3], 0  ;;  %s56_s6 = smov [#allocation2]   ;;  %s73_s0 = inlined_call_operand.hbm [shape: f32[8,256], index: 0, kind: input, shape index: {}]   ;;  %s74_s1 = inlined_call_operand.vmem [shape: f32[8,1], index: 1, kind: output, shape index: {}]  }
   0x1   :  { %s13_s7 = sshll.u32 %s56_s6, 4  ;;  %s14_s7 = int_to_ptr.vmem [resolvable:$true] %s13_s7 }
   0x2   :  { %s42_s8 = scalar_lea.vmem %s14_s7, 256  ;;  %p47_p1 = scmp.lt.s32.totalorder %s14_s7, %s14_s7 }
   0x3   :  { %p43_p0 = scmp.ne.s32.totalorder %s14_s7, %s42_s8  ;;  %p48_p2 = scmp.lt.s32.totalorder %s42_s8, %s42_s8 }
   0x5   :  { %p49_p3 = por %p48_p2, %p47_p1 }
   0x7   :  { %p50_p4 = pnand %p49_p3, %p43_p0 }
   0x9   :  { %53 = shalt.err (!%p50_p4)
}
   0xa   :  { %16 = dma.hbm_to_vmem [thread:$0]  %s73_s0, 256, %s14_s7, [#allocation3]  }
   0xb   :  { %54 = dma.done.wait [#allocation3], 256  }
   0xc   :  { %55 = vsyncadd [#allocation3], 4294967040  ;;  %v20_v0 = vld [vmem:[#allocation2] sm:$0xff]  ;;  %v21_v1 = vld [vmem:[#allocation2 + $0x8] sm:$0xff]  ;;  %vm26_vm0 = vcmask 7168  }
   0xd   :  { %v22_v2 = vadd.f32 %v21_v1, %v20_v0 }
   0xf   :  { %23 = vadd.xlane.f32.xlu0 %v22_v2 }
  0x98   :  { %v24_v3 = vpop.xlane.xlu0 %23 }
  0x99   :  { %v25_v4 = vmul.f32 0.00390625, %v24_v3 }
  0x9b   :  { %27 = vst.msk [vmem:[%s74_s1] sm:$0xff] %vm26_vm0, %v25_v4 }
  0x9c   :  { %32 = vsyncpa [#allocation3], 1 }

</bundles_post_ra>
